<compile_context>
chip_gen: v6e
topology: v6e:2x2x1
jax: 0.10.0
libtpu: 0.0.40
codegen_flags: <defaults>
</compile_context>

<pallas_src>
import functools

import jax
import jax.numpy as jnp
from jax.experimental import pallas as pl
from jax.experimental.pallas import tpu as pltpu


# ----------------------------------------------------------------------------
# Small helpers
# ----------------------------------------------------------------------------
def _cdiv(a, b):
    return -(-a // b)


def _rup(a, b):
    return _cdiv(a, b) * b


_DBL = 2  # Pallas double-buffers each BlockSpec'd operand by default.


@functools.lru_cache(maxsize=None)
def _vmem_plan():
    """(working_set_bytes, vmem_limit_bytes) derived from the actual chip."""
    try:
        info = pltpu.get_tpu_info()
        cap = int(getattr(info, "vmem_capacity_bytes", 0)) or (64 << 20)
    except Exception:  # pragma: no cover - conservative fallback
        cap = 64 << 20
    working = min(int(cap * 0.60), 80 << 20)     # ~38 MiB on v7x, ~77 MiB on v5e/v6e
    limit = int(min(int(cap * 0.85), working + (16 << 20)))
    return working, limit


# ----------------------------------------------------------------------------
# Kernels (pure selects; binding resource is HBM BW, not VALU)
# ----------------------------------------------------------------------------
def _exchange3d_kernel(k1_ref, k2_ref, x0_ref, x1_ref, y1_ref, y2_ref):
    """k*_ref: (TC, 1) f32 keep-mask; x*_ref / y*_ref: (TN, TC, THW)."""
    keep1 = (k1_ref[...] > 0.5)[None, :, :]
    keep2 = (k2_ref[...] > 0.5)[None, :, :]
    x0 = x0_ref[...]
    x1 = x1_ref[...]
    y1_ref[...] = jnp.where(keep1, x0, x1).astype(y1_ref.dtype)
    y2_ref[...] = jnp.where(keep2, x1, x0).astype(y2_ref.dtype)


def _exchange2d_kernel(m1_ref, m2_ref, x0_ref, x1_ref, y1_ref, y2_ref):
    """m*_ref: (1, TL) f32 keep-mask (pre-expanded per lane); x*: (TN, TL)."""
    keep1 = m1_ref[...] > 0.5
    keep2 = m2_ref[...] > 0.5
    x0 = x0_ref[...]
    x1 = x1_ref[...]
    y1_ref[...] = jnp.where(keep1, x0, x1).astype(y1_ref.dtype)
    y2_ref[...] = jnp.where(keep2, x1, x0).astype(y2_ref.dtype)


# ----------------------------------------------------------------------------
# Tile selection
# ----------------------------------------------------------------------------
def _tiles_3d(n, c, hw, isz, working):
    """Blocks (TN, TC, THW) for the (N, C, HW) layout: full-C first, tile N,
    and only tile HW (multiples of 128) if one (1, C, HW) slab is too big."""
    c_pad = _rup(c, 8)
    # Two (TC,1) f32 mask blocks, double buffered, lane-padded 1->128.
    w_vmem = 2 * _DBL * c_pad * 128 * 4
    budget = max(working - w_vmem, working // 4)
    per_block = max(budget // (4 * _DBL), 8 * 128 * isz)   # 2 in + 2 out, 2 bufs

    slab = c * hw * isz                    # one contiguous (1, C, HW) slab
    if slab <= per_block:
        tc, thw = c, hw
        tn = max(1, min(n, per_block // slab))
    else:
        tn = 1
        row = hw * isz
        tc_cap = per_block // max(row, 1)
        if tc_cap >= 8:
            tc = min(c, (tc_cap // 8) * 8)
            thw = hw
        else:
            tc = min(c, 8)
            thw = min(hw, max(128, (per_block // (tc * isz)) // 128 * 128))

    # Keep >= 2 grid steps along a parallel axis so v7x uses both TensorCores.
    if _cdiv(n, tn) == 1 and _cdiv(c, tc) == 1 and _cdiv(hw, thw) == 1:
        if n >= 2:
            tn = _cdiv(n, 2)                       # leading dim: any size legal
        elif c >= 16:
            tc = min(c, _rup(_cdiv(c, 2), 8))
    return tn, tc, thw


def _tiles_2d(n, L, isz, working):
    """Blocks (TN, TL) for the lane-dense (N, C*HW) layout."""
    x_pl = 4 * _DBL * isz          # x/y VMEM bytes per (row, lane)
    m_pl = 2 * _DBL * 8 * 4        # mask VMEM bytes per lane (f32, sublane-padded)
    tn_min = n if n < 8 else 8     # TN must be == N or a multiple of 8

    if tn_min * L * x_pl + L * m_pl <= working:
        tl = L
        tn_cap = (working - L * m_pl) // max(L * x_pl, 1)
        tn = n if tn_cap >= n else max(tn_min, (tn_cap // 8) * 8)
    else:
        tn = tn_min
        tl = min(L, max(128, (working // (tn * x_pl + m_pl)) // 128 * 128))

    # Keep >= 2 grid steps along a parallel axis so v7x uses both TensorCores.
    if _cdiv(n, tn) == 1 and _cdiv(L, tl) == 1:
        if L >= 256:
            tl = _rup(_cdiv(L, 2), 128)
        elif n >= 16:
            tn = _rup(_cdiv(n, 2), 8)
    return tn, tl


# ----------------------------------------------------------------------------
# pallas_call builders
# ----------------------------------------------------------------------------
def _pallas_exchange_3d(k1, k2, x0, x1):
    n, c, hw = x0.shape
    isz = max(jnp.dtype(x0.dtype).itemsize, jnp.dtype(x1.dtype).itemsize)
    working, vmem_limit = _vmem_plan()
    tn, tc, thw = _tiles_3d(n, c, hw, isz, working)
    grid = (pl.cdiv(n, tn), pl.cdiv(c, tc), pl.cdiv(hw, thw))

    x_spec = pl.BlockSpec((tn, tc, thw), lambda i, j, k: (i, j, k))
    k_spec = pl.BlockSpec((tc, 1), lambda i, j, k: (j, 0))

    nbytes = n * c * hw * isz
    cost = pl.CostEstimate(flops=2 * n * c * hw, transcendentals=0,
                           bytes_accessed=4 * nbytes + 2 * c * 4)

    return pl.pallas_call(
        _exchange3d_kernel,
        out_shape=(jax.ShapeDtypeStruct((n, c, hw), x0.dtype),
                   jax.ShapeDtypeStruct((n, c, hw), x1.dtype)),
        grid_spec=pltpu.PrefetchScalarGridSpec(
            num_scalar_prefetch=0,
            grid=grid,
            in_specs=[k_spec, k_spec, x_spec, x_spec],
            out_specs=(x_spec, x_spec)),
        compiler_params=pltpu.CompilerParams(
            dimension_semantics=("parallel", "parallel", "parallel"),
            vmem_limit_bytes=vmem_limit),
        cost_estimate=cost,
    )(k1, k2, x0, x1)


def _pallas_exchange_2d(m1, m2, x0, x1):
    n, L = x0.shape
    isz = max(jnp.dtype(x0.dtype).itemsize, jnp.dtype(x1.dtype).itemsize)
    working, vmem_limit = _vmem_plan()
    tn, tl = _tiles_2d(n, L, isz, working)
    grid = (pl.cdiv(n, tn), pl.cdiv(L, tl))

    x_spec = pl.BlockSpec((tn, tl), lambda i, j: (i, j))
    m_spec = pl.BlockSpec((1, tl), lambda i, j: (0, j))

    nbytes = n * L * isz
    cost = pl.CostEstimate(flops=2 * n * L, transcendentals=0,
                           bytes_accessed=4 * nbytes + 2 * L * 4 * _cdiv(n, tn))

    return pl.pallas_call(
        _exchange2d_kernel,
        out_shape=(jax.ShapeDtypeStruct((n, L), x0.dtype),
                   jax.ShapeDtypeStruct((n, L), x1.dtype)),
        grid_spec=pltpu.PrefetchScalarGridSpec(
            num_scalar_prefetch=0,
            grid=grid,
            in_specs=[m_spec, m_spec, x_spec, x_spec],
            out_specs=(x_spec, x_spec)),
        compiler_params=pltpu.CompilerParams(
            dimension_semantics=("parallel", "parallel"),
            vmem_limit_bytes=vmem_limit),
        cost_estimate=cost,
    )(m1, m2, x0, x1)


# ----------------------------------------------------------------------------
# Jitted entry points (masks are runtime data -> no recompile across thresholds)
# ----------------------------------------------------------------------------
@jax.jit
def _exchange_3d(thr, w1, w2, x0, x1):
    c = x0.shape[1]
    k1 = (jnp.abs(w1) >= thr).astype(jnp.float32).reshape(c, 1)
    k2 = (jnp.abs(w2) >= thr).astype(jnp.float32).reshape(c, 1)
    return _pallas_exchange_3d(k1, k2, x0, x1)


@jax.jit
def _exchange_2d(thr, w1, w2, x0, x1):
    n, c, hw = x0.shape
    L = c * hw
    k1 = (jnp.abs(w1) >= thr).astype(jnp.float32)
    k2 = (jnp.abs(w2) >= thr).astype(jnp.float32)
    m1 = jnp.broadcast_to(k1[:, None], (c, hw)).reshape(1, L)
    m2 = jnp.broadcast_to(k2[:, None], (c, hw)).reshape(1, L)
    y1, y2 = _pallas_exchange_2d(m1, m2, x0.reshape(n, L), x1.reshape(n, L))
    return y1.reshape(n, c, hw), y2.reshape(n, c, hw)


# ----------------------------------------------------------------------------
# Public wrapper (forward pass of the Exchange module)
# ----------------------------------------------------------------------------
def exchange(x_list, bn_weights, bn_threshold):
    """x_list: [x0, x1] NCHW; bn_weights: [w1, w2] each (C,); returns [y1, y2]."""
    x0, x1 = x_list
    w1, w2 = bn_weights
    assert x0.shape == x1.shape, "both inputs must share the NCHW shape"
    n, c, h, w = x0.shape
    hw = h * w

    x0f = x0.reshape(n, c, hw)   # contiguous reshape, no HBM copy
    x1f = x1.reshape(n, c, hw)
    w1v = jnp.asarray(w1, dtype=jnp.float32).reshape(c)
    w2v = jnp.asarray(w2, dtype=jnp.float32).reshape(c)
    thr = jnp.asarray(bn_threshold, dtype=jnp.float32)

    if hw % 128 == 0:
        y1f, y2f = _exchange_3d(thr, w1v, w2v, x0f, x1f)
    else:
        # Ragged spatial size: lane-dense 2D layout avoids masked partial stores.
        y1f, y2f = _exchange_2d(thr, w1v, w2v, x0f, x1f)
    return [y1f.reshape(n, c, h, w), y2f.reshape(n, c, h, w)]


def _reference(x_list, bn_weights, bn_threshold):
    x0, x1 = x_list
    w1, w2 = bn_weights
    m1 = (jnp.abs(w1) >= bn_threshold).reshape(1, -1, 1, 1)
    m2 = (jnp.abs(w2) >= bn_threshold).reshape(1, -1, 1, 1)
    return [jnp.where(m1, x0, x1), jnp.where(m2, x1, x0)]


if __name__ == "__main__":
    base_key = jax.random.PRNGKey(0)

    def run_case(case_id, n, c, h, w, dtype, thr_val):
        key = jax.random.fold_in(base_key, case_id)
        k0, k1, k2, k3 = jax.random.split(key, 4)
        x0 = jax.random.normal(k0, (n, c, h, w), dtype=jnp.float32).astype(dtype)
        x1 = jax.random.normal(k1, (n, c, h, w), dtype=jnp.float32).astype(dtype)
        w1 = jax.random.normal(k2, (c,), dtype=jnp.float32)   # stand-in bn[0].weight
        w2 = jax.random.normal(k3, (c,), dtype=jnp.float32)   # stand-in bn[1].weight

        out = exchange([x0, x1], [w1, w2], thr_val)
        out = [jax.block_until_ready(o) for o in out]
        ref = _reference([x0, x1], [w1, w2], thr_val)
        for o, r in zip(out, ref):
            assert o.shape == r.shape and o.dtype == r.dtype
            assert jnp.array_equal(o, r), "mismatch vs reference"

    # Primary shape from the module: NCHW (2, 4, 16, 16) -> HW=256 -> 3D path.
    run_case(0, 2, 4, 16, 16, jnp.float32, 0.5)
    # Ragged spatial size (7x7) -> lane-dense 2D path.
    run_case(1, 2, 8, 7, 7, jnp.float32, 0.5)
    # dtype robustness (bf16 features, f32 BN weights).
    run_case(2, 2, 4, 16, 16, jnp.bfloat16, 0.25)

    print("KERNEL_OK")
</pallas_src>

<mosaic_0001>
module attributes {stable_mosaic.version = 11 : i64} {
  func.func @_exchange3d_kernel(%arg0: i32, %arg1: i32, %arg2: i32, %arg3: memref<4x1xf32, #tpu.memory_space<vmem>>, %arg4: memref<4x1xf32, #tpu.memory_space<vmem>>, %arg5: memref<1x4x256xf32, #tpu.memory_space<vmem>>, %arg6: memref<1x4x256xf32, #tpu.memory_space<vmem>>, %arg7: memref<1x4x256xf32, #tpu.memory_space<vmem>>, %arg8: memref<1x4x256xf32, #tpu.memory_space<vmem>>) attributes {dimension_semantics = [#tpu.dimension_semantics<parallel>, #tpu.dimension_semantics<parallel>, #tpu.dimension_semantics<parallel>], iteration_bounds = array<i64: 2, 1, 1>, scalar_prefetch = 0 : i64, scratch_operands = 0 : i64, tpu.core_type = #tpu.core_type<tc>, window_params = [{transform_indices = @transform_0, window_bounds = array<i64: 4, 1>}, {transform_indices = @transform_1, window_bounds = array<i64: 4, 1>}, {transform_indices = @transform_2, window_bounds = array<i64: 1, 4, 256>}, {transform_indices = @transform_3, window_bounds = array<i64: 1, 4, 256>}, {transform_indices = @transform_4, window_bounds = array<i64: 1, 4, 256>}, {transform_indices = @transform_5, window_bounds = array<i64: 1, 4, 256>}]} {
    %c0 = arith.constant 0 : index
    %c0_0 = arith.constant 0 : index
    %0 = vector.load %arg3[%c0, %c0_0] : memref<4x1xf32, #tpu.memory_space<vmem>>, vector<4x1xf32>
    %cst = arith.constant 5.000000e-01 : f32
    %1 = vector.broadcast %cst : f32 to vector<4x1xf32>
    %2 = arith.cmpf ogt, %0, %1 : vector<4x1xf32>
    %3 = vector.shape_cast %2 : vector<4x1xi1> to vector<1x4x1xi1>
    %c0_1 = arith.constant 0 : index
    %c0_2 = arith.constant 0 : index
    %4 = vector.load %arg4[%c0_1, %c0_2] : memref<4x1xf32, #tpu.memory_space<vmem>>, vector<4x1xf32>
    %cst_3 = arith.constant 5.000000e-01 : f32
    %5 = vector.broadcast %cst_3 : f32 to vector<4x1xf32>
    %6 = arith.cmpf ogt, %4, %5 : vector<4x1xf32>
    %7 = vector.shape_cast %6 : vector<4x1xi1> to vector<1x4x1xi1>
    %c0_4 = arith.constant 0 : index
    %c0_5 = arith.constant 0 : index
    %c0_6 = arith.constant 0 : index
    %8 = vector.load %arg5[%c0_4, %c0_5, %c0_6] : memref<1x4x256xf32, #tpu.memory_space<vmem>>, vector<1x4x256xf32>
    %c0_7 = arith.constant 0 : index
    %c0_8 = arith.constant 0 : index
    %c0_9 = arith.constant 0 : index
    %9 = vector.load %arg6[%c0_7, %c0_8, %c0_9] : memref<1x4x256xf32, #tpu.memory_space<vmem>>, vector<1x4x256xf32>
    %10 = vector.shape_cast %3 : vector<1x4x1xi1> to vector<1x4x1xi1>
    %11 = vector.broadcast %10 : vector<1x4x1xi1> to vector<1x4x256xi1>
    %12 = arith.select %11, %8, %9 : vector<1x4x256xi1>, vector<1x4x256xf32>
    %c0_10 = arith.constant 0 : index
    %c0_11 = arith.constant 0 : index
    %c0_12 = arith.constant 0 : index
    %13 = vector.load %arg7[%c0_10, %c0_11, %c0_12] : memref<1x4x256xf32, #tpu.memory_space<vmem>>, vector<1x4x256xf32>
    tpu.vector_store %arg7[%c0_10, %c0_11, %c0_12], %12 {strides = array<i32>} : memref<1x4x256xf32, #tpu.memory_space<vmem>>, vector<1x4x256xf32>,
    %14 = vector.shape_cast %7 : vector<1x4x1xi1> to vector<1x4x1xi1>
    %15 = vector.broadcast %14 : vector<1x4x1xi1> to vector<1x4x256xi1>
    %16 = arith.select %15, %9, %8 : vector<1x4x256xi1>, vector<1x4x256xf32>
    %c0_13 = arith.constant 0 : index
    %c0_14 = arith.constant 0 : index
    %c0_15 = arith.constant 0 : index
    %17 = vector.load %arg8[%c0_13, %c0_14, %c0_15] : memref<1x4x256xf32, #tpu.memory_space<vmem>>, vector<1x4x256xf32>
    tpu.vector_store %arg8[%c0_13, %c0_14, %c0_15], %16 {strides = array<i32>} : memref<1x4x256xf32, #tpu.memory_space<vmem>>, vector<1x4x256xf32>,
    return
  }
  func.func @transform_0(%arg0: i32, %arg1: i32, %arg2: i32) -> (i32, i32) {
    %c0_i32 = arith.constant 0 : i32
    %c0_i32_0 = arith.constant 0 : i32
    return %arg1, %c0_i32 : i32, i32
  }
  func.func @transform_1(%arg0: i32, %arg1: i32, %arg2: i32) -> (i32, i32) {
    %c0_i32 = arith.constant 0 : i32
    %c0_i32_0 = arith.constant 0 : i32
    return %arg1, %c0_i32 : i32, i32
  }
  func.func @transform_2(%arg0: i32, %arg1: i32, %arg2: i32) -> (i32, i32, i32) {
    %c0_i32 = arith.constant 0 : i32
    return %arg0, %arg1, %arg2 : i32, i32, i32
  }
  func.func @transform_3(%arg0: i32, %arg1: i32, %arg2: i32) -> (i32, i32, i32) {
    %c0_i32 = arith.constant 0 : i32
    return %arg0, %arg1, %arg2 : i32, i32, i32
  }
  func.func @transform_4(%arg0: i32, %arg1: i32, %arg2: i32) -> (i32, i32, i32) {
    %c0_i32 = arith.constant 0 : i32
    return %arg0, %arg1, %arg2 : i32, i32, i32
  }
  func.func @transform_5(%arg0: i32, %arg1: i32, %arg2: i32) -> (i32, i32, i32) {
    %c0_i32 = arith.constant 0 : i32
    return %arg0, %arg1, %arg2 : i32, i32, i32
  }
}

</mosaic_0001>

<bundles_post_ra>
// kernel: _exchange_3d.1
= control target key start
LH: loop header
LB: loop body
LE: loop exit
PB: predicated region body
PF: predicated region fallthrough
CT: control target
= control target key end

     0   :  { %s1095_s0 = inlined_call_operand.vmem [shape: f32[4,1], index: 0, kind: input, shape index: {}]   ;;  %s1096_s1 = inlined_call_operand.vmem [shape: f32[4,1], index: 1, kind: input, shape index: {}]   ;;  %s1097_s2 = inlined_call_operand.vmem [shape: f32[2,4,256], index: 2, kind: input, shape index: {}]   ;;  %s1098_s3 = inlined_call_operand.hbm [shape: f32[2,4,256], index: 3, kind: input, shape index: {}]   ;;  %s1099_s4 = inlined_call_operand.hbm [shape: f32[2,4,256], index: 4, kind: output, shape index: {0}]   ;;  %s1100_s5 = inlined_call_operand.hbm [shape: f32[2,4,256], index: 5, kind: output, shape index: {1}]  }
   0x1   :  { %1103 = sst [smem:[#allocation11_spill]] %s1095_s0 }
   0x2   :  { %11 = vsyncpa [#allocation3], 0 }
   0x3   :  { %13 = vsyncpa [#allocation3 + $0x1], 0 }
   0x4   :  { %14 = vsyncpa [#allocation4], 0 }
   0x5   :  { %16 = vsyncpa [#allocation4 + $0x1], 0 }
   0x6   :  { %17 = vsyncpa [#allocation7], 0 }
   0x7   :  { %19 = vsyncpa [#allocation7 + $0x1], 0  ;;  %s906_s18 = smov 0   ;;  %s908_s19 = smov 0  }
   0x8   :  { %s910_s20 = smov 0   ;;  %s912_s21 = smov 0  }
   0x9   :  { %s914_s22 = smov 0   ;;  %s916_s23 = smov 0  }
   0xa LB: > { %s634_s24 = sadd.s32 4294967295, %s870_s23   ;;  %s635_s25 = sadd.s32 4294967294, %s870_s23   ;;  %s870_s23 = sphi %s916_s23, %s25_s23   ;;  %s866_s22 = sphi %s914_s22, %s1118_s22   ;;  %s862_s21 = sphi %s912_s21, %s1117_s21   ;;  %s858_s20 = sphi %s910_s20, %s1116_s20   ;;  %s854_s19 = sphi %s908_s19, %s1115_s19   ;;  %s850_s18 = sphi %s906_s18, %s1114_s18  }
   0xb   : > { %s44_s26 = sadd.s32 1, %s866_s22  ;;  %s137_s27 = sadd.s32 1, %s858_s20 }
   0xc   : > { %p46_p0 = scmp.ge.s32.totalorder %s44_s26, 2  ;;  %p144_p1 = scmp.ne.s32.totalorder %s858_s20, %s854_s19 }
   0xd   : > { %p145_p2 = scmp.eq.s32.totalorder %s870_s23, 0  ;;  %p150_p3 = scmp.ne.s32.totalorder %s854_s19, %s850_s18 }
   0xe   : > { %s1120_s26 = smov (%p46_p0, %s44_s26), 0  ;;  %p151_p5 = scmp.eq.s32.totalorder %s634_s24, 0 }
   0xf   : > { %p947_p4 = por %p145_p2, %p144_p1  ;;  %s130_s29 = ssub.s32 %s866_s22, %s1120_s26 }
  0x10   : > { %p178_p6 = scmp.eq.s32.totalorder %s634_s24, 1  ;;  %p135_p7 = scmp.eq.s32.totalorder %s130_s29, 0 }
  0x11   : > { %p953_p8 = por %p151_p5, %p150_p3  ;;  %p184_p10 = scmp.eq.s32.totalorder %s635_s25, 1 }
  0x12   : > { %p957_p9 = por %p178_p6, %p144_p1  ;;  %p678_p13 = scmp.lt.s32.totalorder %s870_s23, 2 }
  0x13   : > { %s962_s7 = scalar_select %p135_p7, %s858_s20, %s137_s27  }
  0x14   : > { %p964_p11 = por %p184_p10, %p150_p3  ;;  %s265_s9 = sand.u32 1, %s858_s20  }
  0x15   : > { %s640_s10 = sshll.u32 %s265_s9, 3  ;;  %s657_s11 = sshll.u32 %s866_s22, 7 }
  0x16   : > { %s1107_s8 = scalar_select %p964_p11, 1, 0 }
  0x17   : > { %s279_s14 = scalar_lea.hbm %s1098_s3, %s657_s11  ;;  %s269_s15 = scalar_lea.vmem [#allocation2], %s640_s10 }
  0x18   : > { %s281_s16 = sshll.u32 %s269_s15, 4  ;;  %p977_p0 = pnand %p678_p13, %p947_p4  ;;  %s282_s16 = int_to_ptr.vmem [resolvable:$true] %s281_s16 }
  0x19   : > { %p643_p1 = scmp.ge.s32.totalorder %s870_s23, 1  ;;  %p286_p2 = scmp.lt.s32.totalorder %s870_s23, 3 }
  0x1a   : > { %s266_s24 = scalar_lea.sflag [#allocation3], %s265_s9  ;;  %p734_p3 = pneg %p977_p0 }
  0x1b   : > { %s745_s25 = scalar_lea.vmem %s282_s16, 128  ;;  %s872_s27 = smov [#allocation2]  }
  0x1c   : > { %p746_p5 = scmp.ne.s32.totalorder %s282_s16, %s745_s25  ;;  %s750_s29 = sshll.u32 %s872_s27, 4  ;;  %s751_s29 = int_to_ptr.vmem [resolvable:$false] %s750_s29 }
  0x1d   : > { %s752_s10 = scalar_lea.vmem %s751_s29, 256  ;;  %p753_p10 = scmp.lt.s32.totalorder %s282_s16, %s751_s29 }
  0x1e   : > { %p748_p6 = pnand %p746_p5, %p734_p3  ;;  %p754_p12 = scmp.lt.s32.totalorder %s752_s10, %s745_s25 }
  0x20   : > { %p749_p7 = pneg %p748_p6  ;;  %p755_p4 = por %p754_p12, %p753_p10 }
  0x22   : > { %p756_p13 = pnand %p755_p4, %p749_p7 }
  0x24   : > { %759 = shalt.err (!%p756_p13)
}
  0x25   : > { %670 = dma.hbm_to_vmem [thread:$0]  (!%p977_p0), %s279_s14, 128, %s282_s16, %s266_s24  }
  0x26   : > { %p287_p11 = pnand %p643_p1, %p286_p2 }
  0x27   : > { %s992_s28 = sand.u32 (!%p287_p11), 1, %s854_s19  }
  0x28   : > { %290 = sbr.rel (%p287_p11) target bundleno = 220 (0xdc), region = 36  ;;  %s995_s9 = sshll.u32 (!%p287_p11), %s992_s28, 3 }
  0x29   : > { %s293_s11 = scalar_lea.sflag (!%p287_p11), [#allocation3], %s992_s28  ;;  %s296_s12 = scalar_lea.vmem (!%p287_p11), [#allocation2], %s995_s9 }
  0x2d   : > { %837 = dma.done.wait (%p953_p8), %s293_s11, 128  }
  0x2e   : > { %839 = vsyncadd (%p953_p8), %s293_s11, 4294967168  ;;  %v873_v0 = vmov 0   ;;  %s1109_s0 = sld [smem:[#allocation11_spill]]  ;;  %v376_v2 = vld [vmem:[%s1096_s1] sm:$0xf]  ;;  %p358_p8 = scmp.lt.s32.totalorder %s862_s21, 1 }
  0x2f   : > { %729 = vset.pattern.permute.xlu0 %v873_v0  ;;  %vm377_vm1 = vcmp.gt.f32.partialorder %v376_v2, 0.5  ;;  %v379_v6 = vld [vmem:[%s296_s12] sm:$0xff]  ;;  %s1102_s29 = sshll.u32 %s862_s21, 7  ;;  %s341_s10 = scalar_lea.vmem [#allocation5], %s995_s9 }
  0x30   : > { %v398_v4 = vsel %vm377_vm1, 1, %v873_v0  ;;  %s359_s30 = scalar_select %p358_p8, %s862_s21, 1  ;;  %v389_v8 = vcombine.high %v379_v6, %v379_v6 }
  0x31   : > { %s434_s11 = sshll.u32 %s341_s10, 4  ;;  %s1021_s15 = scalar_lea.hbm %s1099_s4, %s1102_s29  ;;  %s1023_s11 = int_to_ptr.vmem [resolvable:$true] %s434_s11 }
  0x32   : > { %s658_s17 = sshll.u32 %s359_s30, 3  ;;  %s1101_s12 = scalar_lea.vmem [#allocation6], %s995_s9 }
  0x33   : > { %s369_s27 = scalar_lea.vmem %s1097_s2, %s658_s17  ;;  %s1028_s16 = sshll.u32 %s1101_s12, 4  ;;  %s453_s16 = int_to_ptr.vmem [resolvable:$true] %s1028_s16 }
  0x34   : > { %v374_v1 = vld [vmem:[%s1109_s0] sm:$0xf]  ;;  %s411_s30 = scalar_lea.sflag [#allocation4], %s992_s28  ;;  %s760_s17 = scalar_lea.vmem %s1023_s11, 128 }
  0x35   : > { %vm375_vm0 = vcmp.gt.f32.partialorder %v374_v1, 0.5  ;;  %v378_v5 = vld [vmem:[%s369_s27] sm:$0xff]  ;;  %p761_p11 = scmp.ne.s32.totalorder %s1023_s11, %s760_s17  ;;  %s874_s24 = smov [#allocation5]  }
  0x36   : > { %v380_v3 = vsel %vm375_vm0, 1, %v873_v0  ;;  %v386_v7 = vcombine.high %v378_v5, %v378_v5  ;;  %s764_s25 = sshll.u32 %s874_s24, 4  ;;  %s765_s25 = int_to_ptr.vmem [resolvable:$false] %s764_s25 }
  0x37   : > { %382 = vperm.xlu0 %729, %v380_v3   ;;  %p762_p12 = pnand %p761_p11, %p957_p9  ;;  %s766_s27 = scalar_lea.vmem %s765_s25, 256 }
  0x38   : > { %p767_p1 = scmp.lt.s32.totalorder %s1023_s11, %s765_s25  ;;  %p768_p2 = scmp.lt.s32.totalorder %s766_s27, %s760_s17 }
  0x39   : > { %p763_p0 = pneg %p762_p12 }
  0x3a   : > { %p769_p3 = por %p768_p2, %p767_p1 }
  0x3b   : > { %400 = vperm.xlu0 %729, %v398_v4  }
  0x3c   : > { %p770_p5 = pnand %p769_p3, %p763_p0 }
  0xb2   : > { %v383_v9 = vpop.permute.xlu0 %382 }
  0xb3   : > { %vm384_vm2 = vcmp.eq.s32.totalorder %v383_v9, 1 }
  0xb4   : > { %v391_v10 = vsel %vm384_vm2, %v378_v5, %v379_v6  ;;  %v392_v11 = vsel %vm384_vm2, %v386_v7, %v389_v8 }
  0xb5   : > { %v395_v12 = vcombine.low %v391_v10, %v392_v11 }
  0xb6   : > { %v401_v13 = vpop.permute.xlu0 %400 }
  0xb7   : > { %vm402_vm3 = vcmp.eq.s32.totalorder %v401_v13, 1  ;;  %397 = vst [vmem:[%s341_s10] sm:$0xff] %v395_v12 }
  0xb8   : > { %v403_v14 = vsel %vm402_vm3, %v379_v6, %v378_v5  ;;  %v404_v15 = vsel %vm402_vm3, %v389_v8, %v386_v7 }
  0xb9   : > { %773 = shalt.err (!%p770_p5)
}
  0xba   : > { %s774_s10 = scalar_lea.hbm %s1021_s15, 128  ;;  %s778_s24 = scalar_lea.hbm %s1099_s4, 256 }
  0xbb   : > { %p775_p6 = scmp.ne.s32.totalorder %s1021_s15, %s774_s10  ;;  %p779_p4 = scmp.lt.s32.totalorder %s1021_s15, %s1099_s4 }
  0xbc   : > { %p780_p13 = scmp.lt.s32.totalorder %s778_s24, %s774_s10 }
  0xbd   : > { %p776_p7 = pnand %p775_p6, %p957_p9 }
  0xbe   : > { %p781_p8 = por %p780_p13, %p779_p4 }
  0xbf   : > { %p777_p10 = pneg %p776_p7 }
  0xc1   : > { %p782_p11 = pnand %p781_p8, %p777_p10 }
  0xc3   : > { %785 = shalt.err (!%p782_p11)
}
  0xc4   : > { %663 = dma.vmem_to_hbm [thread:$0]  (%p957_p9), %s1023_s11, 128, %s1021_s15, %s411_s30   ;;  %v407_v16 = vcombine.low %v403_v14, %v404_v15 }
  0xc5   : > { %s1110_s17 = sshll.u32 %s862_s21, 7  ;;  %s1111_s12 = scalar_lea.vmem [#allocation6], %s995_s9 }
  0xc6   : > { %s450_s29 = scalar_lea.hbm %s1100_s5, %s1110_s17  ;;  %409 = vst [vmem:[%s1111_s12] sm:$0xff] %v407_v16  ;;  %s416_s10 = scalar_lea.sflag [#allocation7], %s992_s28 }
  0xc7   : > { %s786_s13 = scalar_lea.vmem %s453_s16, 128  ;;  %s875_s14 = smov [#allocation6]  }
  0xc8   : > { %p787_p12 = scmp.ne.s32.totalorder %s453_s16, %s786_s13  ;;  %s790_s24 = sshll.u32 %s875_s14, 4  ;;  %s791_s24 = int_to_ptr.vmem [resolvable:$false] %s790_s24 }
  0xc9   : > { %s792_s0 = scalar_lea.vmem %s791_s24, 256  ;;  %p793_p2 = scmp.lt.s32.totalorder %s453_s16, %s791_s24 }
  0xca   : > { %p788_p0 = pnand %p787_p12, %p957_p9  ;;  %p794_p3 = scmp.lt.s32.totalorder %s792_s0, %s786_s13 }
  0xcc   : > { %p789_p1 = pneg %p788_p0  ;;  %p795_p5 = por %p794_p3, %p793_p2 }
  0xce   : > { %p796_p6 = pnand %p795_p5, %p789_p1 }
  0xd0   : > { %799 = shalt.err (!%p796_p6)
}
  0xd1   : > { %s800_s21 = scalar_lea.hbm %s450_s29, 128  ;;  %s804_s11 = scalar_lea.hbm %s1100_s5, 256 }
  0xd2   : > { %p801_p7 = scmp.ne.s32.totalorder %s450_s29, %s800_s21  ;;  %p805_p13 = scmp.lt.s32.totalorder %s450_s29, %s1100_s5 }
  0xd3   : > { %p806_p8 = scmp.lt.s32.totalorder %s804_s11, %s800_s21 }
  0xd4   : > { %p802_p10 = pnand %p801_p7, %p957_p9 }
  0xd5   : > { %p807_p11 = por %p806_p8, %p805_p13 }
  0xd6   : > { %p803_p4 = pneg %p802_p10 }
  0xd8   : > { %p808_p12 = pnand %p807_p11, %p803_p4 }
  0xda   : > { %811 = shalt.err (!%p808_p12)
}
  0xdb   : > { %664 = dma.vmem_to_hbm [thread:$0]  (%p957_p9), %s453_s16, 128, %s450_s29, %s416_s10  }
  0xdc PF: > { %s464_s0 = sand.u32 1, %s850_s18   ;;  %p1112_p0 = scmp.ne.s32.totalorder %s1107_s8, 0 }
  0xdd   : > { %p1113_p1 = scmp.ge.s32.totalorder %s870_s23, 2  ;;  %s465_s17 = scalar_lea.sflag [#allocation4], %s464_s0 }
  0xdf   : > { %p672_p2 = pnand %p1113_p1, %p1112_p0 }
  0xe1   : > { %p673_p3 = pneg %p672_p2 }
  0xe3   : > { %841 = dma.done.wait (%p673_p3), %s465_s17, 128  }
  0xe4   : > { %843 = vsyncadd (%p673_p3), %s465_s17, 4294967168  ;;  %s474_s25 = scalar_lea.sflag [#allocation7], %s464_s0 }
  0xe5   : > { %845 = dma.done.wait (%p673_p3), %s474_s25, 128  }
  0xe6   : > { %847 = vsyncadd (%p673_p3), %s474_s25, 4294967168  ;;  %s25_s23 = sadd.s32 1, %s870_s23   ;;  %s1114_s18 = smov %s854_s19 }
  0xe7   : > { %p22_p5 = scmp.ge.s32.totalorder %s25_s23, 4   ;;  %s1115_s19 = smov %s858_s20 }
  0xe8   : > { %s1116_s20 = smov %s962_s7  ;;  %s1117_s21 = smov %s866_s22 }
  0xe9   : > { %s1118_s22 = smov %s1120_s26  ;;  %24 = sbr.rel (!%p22_p5) target bundleno = 10 (0xa), region = 107 }
  0xee   :  { %479 = vsyncpa [#allocation3], 1 }
  0xef   :  { %481 = vsyncpa [#allocation3 + $0x1], 1 }
  0xf0   :  { %482 = vsyncpa [#allocation4], 1 }
  0xf1   :  { %484 = vsyncpa [#allocation4 + $0x1], 1 }
  0xf2   :  { %485 = vsyncpa [#allocation7], 1 }
  0xf3   :  { %487 = vsyncpa [#allocation7 + $0x1], 1 }

</bundles_post_ra>
